<compile_context>
chip_gen: v7x
topology: tpu7x:2x2x1
jax: 0.10.0
libtpu: 0.0.40
codegen_flags: <defaults>
</compile_context>

<pallas_src>
import functools

import jax
import jax.numpy as jnp
from jax import lax
from jax.experimental import pallas as pl
from jax.experimental.pallas import tpu as pltpu


def _round_up(x, m):
    return ((x + m - 1) // m) * m


# ----------------------------------------------------------------------------
# Path 1: small vocabulary -- one-hot @ table matmul (table resident in VMEM).
# ----------------------------------------------------------------------------
def _emb_onehot_kernel(ind_ref, table_ref, out_ref):
    # ind_ref:   (BN, 1)                 int32  block of flattened indices
    # table_ref: (num_embs_p, emb_dim_p) f32    full (padded) embedding table
    # out_ref:   (BN, emb_dim_p)
    ids = ind_ref[...]                                     # (BN, 1)
    bn = ids.shape[0]
    rows = table_ref.shape[0]
    iota = lax.broadcasted_iota(jnp.int32, (bn, rows), 1)
    # 0/1 one-hot is exact in the table dtype (also bf16); gather == matmul.
    # Note: out-of-range indices produce an all-zero row here (torch raises).
    onehot = (iota == ids).astype(table_ref.dtype)         # (BN, rows)
    out_ref[...] = jnp.dot(
        onehot, table_ref[...], preferred_element_type=jnp.float32
    ).astype(out_ref.dtype)


# ----------------------------------------------------------------------------
# Path 2: large vocabulary -- DMA row gather (table stays in HBM).
# ----------------------------------------------------------------------------
def _emb_gather_kernel(ids_ref, table_ref, out_ref, buf_ref, sem, *, block_rows):
    # ids_ref:   (n_pad,)                int32 in SMEM (scalar-prefetched)
    # table_ref: (num_embs, emb_dim_p)   in HBM (memory_space=pl.ANY)
    # out_ref:   (block_rows, emb_dim_p) VMEM output block
    # buf_ref:   (block_rows, emb_dim_p) VMEM staging buffer
    # sem:       single DMA semaphore shared by all row copies of this block
    num_rows = table_ref.shape[0]
    base = pl.program_id(0) * block_rows

    def issue(j, carry):
        row = ids_ref[base + j]
        # Clamp like jnp.take (and to keep the DMA in bounds).
        row = jnp.minimum(jnp.maximum(row, 0), num_rows - 1)
        pltpu.make_async_copy(
            table_ref.at[pl.ds(row, 1), :],
            buf_ref.at[pl.ds(j, 1), :],
            sem,
        ).start()
        return carry

    lax.fori_loop(0, block_rows, issue, 0)

    def drain(j, carry):
        # Every copy has the identical (1, emb_dim_p) shape, so waiting
        # block_rows times on the shared semaphore drains exactly all signals.
        pltpu.make_async_copy(
            table_ref.at[pl.ds(0, 1), :],
            buf_ref.at[pl.ds(j, 1), :],
            sem,
        ).wait()
        return carry

    lax.fori_loop(0, block_rows, drain, 0)

    out_ref[...] = buf_ref[...]


# ----------------------------------------------------------------------------
# Wrapper
# ----------------------------------------------------------------------------
@functools.partial(jax.jit, static_argnames=("block_n",))
def emb_transform(ind, table, *, block_n=256):
    """Pallas equivalent of EmbTransform.forward: table[ind]."""
    num_embs, emb_dim = table.shape
    orig_shape = ind.shape
    flat = ind.reshape(-1).astype(jnp.int32)
    n = flat.shape[0]

    # Lane-dense output: pad the embedding dim up to a multiple of 128.
    emb_dim_p = _round_up(emb_dim, 128)

    # Rows per grid step: large enough to amortize per-step pipeline overhead
    # and fill the MXU / produce big output DMAs, but clamped for tiny inputs.
    eff_bn = min(block_n, _round_up(n, 8))
    n_pad = _round_up(n, eff_bn)
    if n_pad != n:
        flat = jnp.pad(flat, (0, n_pad - n))  # pads with row 0; sliced off below
    grid = (n_pad // eff_bn,)

    table_bytes = num_embs * emb_dim_p * table.dtype.itemsize
    use_onehot = (num_embs <= 1024) and (table_bytes <= 2 * 1024 * 1024)

    if use_onehot:
        # Small table: keep it VMEM-resident, gather via one-hot @ table (MXU).
        num_embs_p = _round_up(num_embs, 8)
        table_p = table
        if (num_embs_p, emb_dim_p) != (num_embs, emb_dim):
            table_p = jnp.pad(
                table, ((0, num_embs_p - num_embs), (0, emb_dim_p - emb_dim)))
        flat2d = flat.reshape(n_pad, 1)
        out = pl.pallas_call(
            _emb_onehot_kernel,
            out_shape=jax.ShapeDtypeStruct((n_pad, emb_dim_p), table.dtype),
            grid_spec=pltpu.PrefetchScalarGridSpec(
                num_scalar_prefetch=0,
                grid=grid,
                in_specs=[
                    pl.BlockSpec((eff_bn, 1), lambda i: (i, 0)),          # indices
                    pl.BlockSpec((num_embs_p, emb_dim_p), lambda i: (0, 0)),  # table
                ],
                out_specs=pl.BlockSpec((eff_bn, emb_dim_p), lambda i: (i, 0)),
            ),
            compiler_params=pltpu.CompilerParams(
                dimension_semantics=("parallel",),
            ),
        )(flat2d, table_p)
    else:
        # Large vocab: do NOT pull the table into VMEM (v7x has only 64 MiB);
        # leave it in HBM and DMA exactly the rows we need. Indices live in
        # SMEM via scalar prefetch.
        # TODO(synk): for N larger than ~250k indices, chunk the SMEM index
        # array instead of scalar-prefetching it whole.
        table_p = table
        if emb_dim_p != emb_dim:
            table_p = jnp.pad(table, ((0, 0), (0, emb_dim_p - emb_dim)))
        kernel = functools.partial(_emb_gather_kernel, block_rows=eff_bn)
        out = pl.pallas_call(
            kernel,
            out_shape=jax.ShapeDtypeStruct((n_pad, emb_dim_p), table.dtype),
            grid_spec=pltpu.PrefetchScalarGridSpec(
                num_scalar_prefetch=1,                      # flat indices -> SMEM
                grid=grid,
                in_specs=[pl.BlockSpec(memory_space=pl.ANY)],   # table stays in HBM
                out_specs=pl.BlockSpec((eff_bn, emb_dim_p), lambda i, ids: (i, 0)),
                scratch_shapes=[
                    pltpu.VMEM((eff_bn, emb_dim_p), table.dtype),
                    pltpu.SemaphoreType.DMA,
                ],
            ),
            compiler_params=pltpu.CompilerParams(
                dimension_semantics=("parallel",),
            ),
        )(flat, table_p)

    out = out[:n, :emb_dim]
    return out.reshape(orig_shape + (emb_dim,))


if __name__ == "__main__":
    key = jax.random.PRNGKey(0)
    k_w, k_i, k_w2, k_i2 = jax.random.split(key, 4)

    # --- small-vocab path (one-hot @ table on the MXU) ------------------------
    num_embs, emb_dim = 10, 32
    emb_weight = jax.random.normal(k_w, (num_embs, emb_dim), dtype=jnp.float32)
    ind = jax.random.randint(k_i, (2, 8), 0, num_embs, dtype=jnp.int32)

    out = emb_transform(ind, emb_weight)
    out = jax.block_until_ready(out)
    ref = jnp.take(emb_weight, ind, axis=0)
    assert out.shape == ind.shape + (emb_dim,), out.shape
    assert jnp.allclose(out, ref, atol=1e-6), "small-vocab path mismatch"

    # --- large-vocab path (SMEM-prefetched indices + HBM row-gather DMA) ------
    num_embs2, emb_dim2 = 2048, 128
    emb_weight2 = jax.random.normal(k_w2, (num_embs2, emb_dim2), dtype=jnp.float32)
    ind2 = jax.random.randint(k_i2, (3, 40), 0, num_embs2, dtype=jnp.int32)

    out2 = emb_transform(ind2, emb_weight2)
    out2 = jax.block_until_ready(out2)
    ref2 = jnp.take(emb_weight2, ind2, axis=0)
    assert out2.shape == ind2.shape + (emb_dim2,), out2.shape
    assert jnp.allclose(out2, ref2, atol=1e-6), "large-vocab path mismatch"

    print("KERNEL_OK")
</pallas_src>

<mosaic_0001>
module attributes {stable_mosaic.version = 11 : i64} {
  func.func @_emb_onehot_kernel(%arg0: i32, %arg1: memref<16x1xi32, #tpu.memory_space<vmem>>, %arg2: memref<16x128xf32, #tpu.memory_space<vmem>>, %arg3: memref<16x128xf32, #tpu.memory_space<vmem>>) attributes {dimension_semantics = [#tpu.dimension_semantics<parallel>], iteration_bounds = array<i64: 1>, scalar_prefetch = 0 : i64, scratch_operands = 0 : i64, tpu.core_type = #tpu.core_type<tc>, window_params = [{transform_indices = @transform_0, window_bounds = array<i64: 16, 1>}, {pipeline_mode = #tpu.pipeline_mode<synchronous>, transform_indices = @transform_1, window_bounds = array<i64: 16, 128>}, {transform_indices = @transform_2, window_bounds = array<i64: 16, 128>}]} {
    %c0 = arith.constant 0 : index
    %c0_0 = arith.constant 0 : index
    %0 = vector.load %arg1[%c0, %c0_0] : memref<16x1xi32, #tpu.memory_space<vmem>>, vector<16x1xi32>
    %1 = tpu.iota {dimensions = array<i32: 1>} : vector<16x16xi32>
    %2 = vector.broadcast %0 : vector<16x1xi32> to vector<16x16xi32>
    %3 = arith.cmpi eq, %1, %2 : vector<16x16xi32>
    %4 = arith.extui %3 : vector<16x16xi1> to vector<16x16xi32>
    %5 = arith.sitofp %4 : vector<16x16xi32> to vector<16x16xf32>
    %c0_1 = arith.constant 0 : index
    %c0_2 = arith.constant 0 : index
    %6 = vector.load %arg2[%c0_1, %c0_2] : memref<16x128xf32, #tpu.memory_space<vmem>>, vector<16x128xf32>
    %cst = arith.constant dense<0.000000e+00> : vector<16x128xf32>
    %7 = tpu.matmul %5, %6, %cst {dimension_numbers = #tpu.dot_dimension_numbers<[1], [0], [0], [1], [0, 0, 1, 1], [], []>} : vector<16x16xf32>, vector<16x128xf32>, vector<16x128xf32> -> vector<16x128xf32>
    %c0_3 = arith.constant 0 : index
    %c0_4 = arith.constant 0 : index
    %8 = vector.load %arg3[%c0_3, %c0_4] : memref<16x128xf32, #tpu.memory_space<vmem>>, vector<16x128xf32>
    tpu.vector_store %arg3[%c0_3, %c0_4], %7 {strides = array<i32>} : memref<16x128xf32, #tpu.memory_space<vmem>>, vector<16x128xf32>,
    return
  }
  func.func @transform_0(%arg0: i32) -> (i32, i32) {
    %c0_i32 = arith.constant 0 : i32
    %c0_i32_0 = arith.constant 0 : i32
    return %arg0, %c0_i32 : i32, i32
  }
  func.func @transform_1(%arg0: i32) -> (i32, i32) {
    %c0_i32 = arith.constant 0 : i32
    %c0_i32_0 = arith.constant 0 : i32
    %c0_i32_1 = arith.constant 0 : i32
    return %c0_i32, %c0_i32_0 : i32, i32
  }
  func.func @transform_2(%arg0: i32) -> (i32, i32) {
    %c0_i32 = arith.constant 0 : i32
    %c0_i32_0 = arith.constant 0 : i32
    return %arg0, %c0_i32 : i32, i32
  }
}

</mosaic_0001>

<bundles_post_ra>
// kernel: emb_transform.1
= control target key start
LH: loop header
LB: loop body
LE: loop exit
PB: predicated region body
PF: predicated region fallthrough
CT: control target
= control target key end

     0   :  { %v139_v0 = vmov 0   ;;  %v13_v6 = vlaneseq  ;;  %vm29_vm0 = vcmask 130048   ;;  %v140_v9 = vmov 0.0   ;;  %s174_s0 = inlined_call_operand.vmem [shape: s32[16,1], index: 0, kind: input, shape index: {}]   ;;  %s175_s1 = inlined_call_operand.vmem [shape: f32[16,128], index: 1, kind: input, shape index: {}]   ;;  %s176_s2 = inlined_call_operand.vmem [shape: f32[16,128], index: 2, kind: output, shape index: {}]  }
   0x1   :  { %138 = vset.pattern.permute.xlu0 %v139_v0  ;;  %v11_v1 = vld [vmem:[%s174_s0] sm:$0xff]  ;;  %v28_v3 = vld [vmem:[%s175_s1 + $0x8] sm:$0xff] }
   0x2   :  { %v27_v2 = vld [vmem:[%s175_s1] sm:$0xff]  ;;  %16 = vperm.xlu0 %138, %v11_v1   ;;  %v12_v4 = vld [vmem:[%s174_s0 + $0x8] sm:$0xff]  ;;  %v14_v7 = vand.u32 127, %v13_v6 }
   0x3   :  { %v132_v5 = vpack.c.bf16 %v28_v3, %v27_v2 }
   0x5   :  { %133 = vmatprep.subr.bf16.mxu0 %v132_v5 }
   0x6   :  { %19 = vperm.xlu0 %138, %v12_v4   ;;  %135 = vmatpush3.bf16.msra.mxu0 %v132_v5 }
  0x81   :  { %v17_v8 = vpop.permute.xlu0 %16 }
  0x82   :  { %vm21_vm1 = vcmp.eq.s32.totalorder %v14_v7, %v17_v8 }
  0x83   :  { %v117_v10 = vsel %vm21_vm1, 1.0, %v140_v9 }
  0x84   :  { %129 = vmatprep.mubr.msk.f32.mxu0 %vm29_vm0, %v117_v10 }
  0x85   :  { %v20_v11 = vpop.permute.xlu0 %19 }
  0x86   :  { %vm22_vm2 = vcmp.eq.s32.totalorder %v14_v7, %v20_v11 }
  0x87   :  { %v118_v12 = vsel %vm22_vm2, 1.0, %v140_v9 }
  0x88   :  { %130 = vmatmul.mubr.msk.f32.vlgmr.msra.gmra.mrb[0].mxu0 %vm29_vm0, %v118_v12 }
 0x15b   :  { %v131_v13 = vpop.f32.mrb[0].mxu0 }
 0x15c   :  { %112 = vst [vmem:[%s176_s2 + $0x8] sm:$0xff] %v131_v13  ;;  %v102_v14 = vpop.f32.mrb[1].mxu0 }
 0x15d   :  { %111 = vst [vmem:[%s176_s2] sm:$0xff] %v102_v14 }

</bundles_post_ra>
